<compile_context>
chip_gen: v7x
topology: tpu7x:2x2x1
jax: 0.10.0
libtpu: 0.0.40
codegen_flags: <defaults>
</compile_context>

<pallas_src>
import functools
import math

import jax
import jax.numpy as jnp
import numpy as np
from jax import lax
from jax.experimental import pallas as pl
from jax.experimental.pallas import tpu as pltpu

_HIGHEST = lax.Precision.HIGHEST


def _round_up(a, b):
    return -(-a // b) * b


# ----------------------------------------------------------------------------
# Pallas kernel: fourier expansion + MLP + domain mask on packed rows
# ----------------------------------------------------------------------------
def _fourier_mlp_kernel(x_ref, s_ref, bounds_ref, sel_ref,
                        w1_ref, b1_ref, w2_ref, b2_ref, out_ref,
                        *, dim_x: int, mlp_precision):
    x = x_ref[...]                                     # (bt, pack*dim_x)  f32

    # Fourier expansion as one small block-diagonal matmul with precomputed
    # reciprocals of the periods (no concat, no divide).  HIGHEST here is
    # negligible (K = pack*dim_x) and keeps sin() args at f32 accuracy.
    arg = jnp.dot(x, s_ref[...], preferred_element_type=jnp.float32,
                  precision=_HIGHEST)                  # (bt, pack*nf*dim_x)
    expanded = jnp.sin(arg)                            # EUP slot

    # Inner module: Linear -> ReLU -> Linear on block-diagonal (kron) weights
    # so the packed-lane layout is preserved end to end.
    h = jnp.dot(expanded, w1_ref[...], preferred_element_type=jnp.float32,
                precision=mlp_precision)
    h = jnp.maximum(h + b1_ref[...], 0.0)              # (bt, pack*hidden)
    out = jnp.dot(h, w2_ref[...], preferred_element_type=jnp.float32,
                  precision=mlp_precision)
    out = out + b2_ref[...]                            # (bt, pack*dout)  lane-dense

    # Domain mask (vectorized): full-width compares against baked bounds rows,
    # then one tiny 0/1-selector matmul fans the per-group in-domain count out
    # to that group's output lanes; a single compare finishes the all() mask.
    lows = bounds_ref[0:1, :]                          # (1, pack*dim_x)
    highs = bounds_ref[1:2, :]                         # (1, pack*dim_x)
    inb = ((x < highs) & (x > lows)).astype(jnp.float32)    # (bt, pack*dim_x)
    cnt = jnp.dot(inb, sel_ref[...],
                  preferred_element_type=jnp.float32)  # (bt, pack*dout)
    mask = cnt > (float(dim_x) - 0.5)                  # all dims in-domain

    out_ref[...] = jnp.where(mask, out, 0.0)           # full-width 128-lane vst


# ----------------------------------------------------------------------------
# Wrapper
# ----------------------------------------------------------------------------
def module_on_fourier_expanded_input(x, params, x_range, num_fourier,
                                     *, row_tile=16384,
                                     mlp_precision=lax.Precision.DEFAULT):
    """x: (..., dim_x). x_range: per-dim (low, high) pairs (ctor constants).
    Returns (..., dout) float32."""
    dim_x = x.shape[-1]
    batch_shape = x.shape[:-1]
    n_rows = int(np.prod(batch_shape)) if batch_shape else 1

    w1 = params["w1"].astype(jnp.float32)
    b1 = jnp.reshape(params["b1"], (1, -1)).astype(jnp.float32)
    w2 = params["w2"].astype(jnp.float32)
    b2 = jnp.reshape(params["b2"], (1, -1)).astype(jnp.float32)
    hidden = w1.shape[1]
    dout = w2.shape[1]
    assert w1.shape[0] == dim_x * num_fourier

    # Rows packed along the lane axis so the output store is 128-lane dense.
    pack = max(1, min(8, 128 // dout)) if dout <= 128 else 1

    # Constructor-time constants: lows/highs and the Fourier scale matrix.
    xr = np.asarray(x_range, dtype=np.float32).T       # row0 = lows, row1 = highs
    span = 2.0 * np.abs(xr[1] - xr[0])                 # (dim_x,)
    with np.errstate(divide="ignore"):
        inv = np.stack([1.0 / np.floor(span / float(n + 1))
                        for n in range(num_fourier)]).astype(np.float32)
    s = np.zeros((dim_x, num_fourier * dim_x), np.float32)
    for n in range(num_fourier):
        for d in range(dim_x):
            s[d, n * dim_x + d] = inv[n, d]            # expanded = sin(x @ s)

    s_big = jnp.asarray(np.kron(np.eye(pack, dtype=np.float32), s))
    eye = jnp.eye(pack, dtype=jnp.float32)
    w1_big = jnp.kron(eye, w1)                         # (pack*nf*dim_x, pack*hidden)
    w2_big = jnp.kron(eye, w2)                         # (pack*hidden,  pack*dout)
    b1_big = jnp.tile(b1, (1, pack))                   # (1, pack*hidden)
    b2_big = jnp.tile(b2, (1, pack))                   # (1, pack*dout)

    # Baked bounds rows and the 0/1 mask-selector matrix.
    bounds = jnp.asarray(np.stack([np.tile(xr[0], pack),
                                   np.tile(xr[1], pack)]))        # (2, pack*dim_x)
    sel = jnp.asarray(np.kron(np.eye(pack, dtype=np.float32),
                              np.ones((dim_x, dout), np.float32)))  # (pack*dim_x, pack*dout)

    # Row tiling: large tiles amortize the ~0.35 us per-grid-step overhead; cap
    # so small problems aren't over-padded, and keep >= 2 grid steps when the
    # problem allows it so both v7x TensorCores get work.
    align = 8 * pack
    assert row_tile % align == 0, "row_tile must be a multiple of 8*pack"
    half = _round_up(max(1, -(-n_rows // 2)), align)
    tile_rows = max(align, min(row_tile, half))
    n_pad = _round_up(n_rows, tile_rows)

    x2 = x.reshape(n_rows, dim_x)
    if x2.dtype != jnp.float32:
        x2 = x2.astype(jnp.float32)
    if n_pad != n_rows:
        x2 = jnp.pad(x2, ((0, n_pad - n_rows), (0, 0)))
    x_packed = x2.reshape(n_pad // pack, pack * dim_x)   # row-major repack (free)

    bt = tile_rows // pack
    r_pad = n_pad // pack
    kernel = functools.partial(_fourier_mlp_kernel, dim_x=dim_x,
                               mlp_precision=mlp_precision)

    out_packed = pl.pallas_call(
        kernel,
        out_shape=jax.ShapeDtypeStruct((r_pad, pack * dout), jnp.float32),
        grid=(r_pad // bt,),
        in_specs=[
            pl.BlockSpec((bt, pack * dim_x), lambda i: (i, 0)),      # x (packed)
            pl.BlockSpec(tuple(s_big.shape), lambda i: (0, 0)),      # fourier scales
            pl.BlockSpec(tuple(bounds.shape), lambda i: (0, 0)),     # lows/highs rows
            pl.BlockSpec(tuple(sel.shape), lambda i: (0, 0)),        # mask selector
            pl.BlockSpec(tuple(w1_big.shape), lambda i: (0, 0)),     # W1 (block-diag)
            pl.BlockSpec(tuple(b1_big.shape), lambda i: (0, 0)),     # b1
            pl.BlockSpec(tuple(w2_big.shape), lambda i: (0, 0)),     # W2 (block-diag)
            pl.BlockSpec(tuple(b2_big.shape), lambda i: (0, 0)),     # b2
        ],
        out_specs=pl.BlockSpec((bt, pack * dout), lambda i: (i, 0)),  # lane-dense
        compiler_params=pltpu.CompilerParams(
            dimension_semantics=("parallel",),
            vmem_limit_bytes=32 * 1024 * 1024),
    )(x_packed, s_big, bounds, sel, w1_big, b1_big, w2_big, b2_big)

    out = out_packed.reshape(n_pad, dout)[:n_rows]
    return out.reshape(*batch_shape, dout)


# ----------------------------------------------------------------------------
# Pure-JAX reference (mirrors the PyTorch forward) for verification.
# ----------------------------------------------------------------------------
def reference(x, params, x_range, num_fourier,
              *, mlp_precision=lax.Precision.DEFAULT):
    xr = jnp.asarray(np.asarray(x_range, dtype=np.float32).T)   # (2, dim_x)
    lows, highs = xr[0], xr[1]
    span = 2.0 * jnp.abs(highs - lows)
    expanded = jnp.concatenate(
        [jnp.sin(x / jnp.floor(span / float(n + 1)))
         for n in range(num_fourier)], axis=-1)
    b1 = jnp.reshape(params["b1"], (-1,))
    b2 = jnp.reshape(params["b2"], (-1,))
    h = jnp.maximum(
        jnp.dot(expanded, params["w1"], precision=mlp_precision) + b1, 0.0)
    out = jnp.dot(h, params["w2"], precision=mlp_precision) + b2
    in_domain = jnp.all(x < highs, axis=-1) & jnp.all(x > lows, axis=-1)
    return jnp.where(in_domain[..., None], out, jnp.zeros_like(out))


if __name__ == "__main__":
    # Small shapes consistent with the module:
    #   x: (batch=2, seq=8, dim_x=2), num_fourier=4 -> expanded dim 8
    #   inner MLP: 8 -> 32 -> 16
    batch, seq, dim_x = 2, 8, 2
    num_fourier = 4
    hidden, dout = 32, 16
    din_exp = dim_x * num_fourier

    # x_range as passed to the module ctor: per-dim (low, high).
    x_range = ((-3.0, 3.0), (-3.0, 3.0))

    key = jax.random.PRNGKey(0)
    kx, kw1, kb1, kw2, kb2 = jax.random.split(key, 5)
    x = 2.0 * jax.random.normal(kx, (batch, seq, dim_x), dtype=jnp.float32)

    # Deterministic parameter init for the inner module (synthetic weights).
    params = {
        "w1": (jax.random.normal(kw1, (din_exp, hidden), dtype=jnp.float32)
               / math.sqrt(din_exp)),
        "b1": 0.01 * jax.random.normal(kb1, (1, hidden), dtype=jnp.float32),
        "w2": (jax.random.normal(kw2, (hidden, dout), dtype=jnp.float32)
               / math.sqrt(hidden)),
        "b2": 0.01 * jax.random.normal(kb2, (1, dout), dtype=jnp.float32),
    }

    out = module_on_fourier_expanded_input(x, params, x_range, num_fourier)
    out = jax.block_until_ready(out)

    ref = reference(x, params, x_range, num_fourier)
    np.testing.assert_allclose(np.asarray(out), np.asarray(ref),
                               rtol=1e-3, atol=1e-3)
    assert out.shape == (batch, seq, dout)

    print("KERNEL_OK")
</pallas_src>

<mosaic_0001>
module attributes {stable_mosaic.version = 11 : i64} {
  func.func @_fourier_mlp_kernel(%arg0: i32, %arg1: memref<8x16xf32, #tpu.memory_space<vmem>>, %arg2: memref<16x64xf32, #tpu.memory_space<vmem>>, %arg3: memref<2x16xf32, #tpu.memory_space<vmem>>, %arg4: memref<16x128xf32, #tpu.memory_space<vmem>>, %arg5: memref<64x256xf32, #tpu.memory_space<vmem>>, %arg6: memref<1x256xf32, #tpu.memory_space<vmem>>, %arg7: memref<256x128xf32, #tpu.memory_space<vmem>>, %arg8: memref<1x128xf32, #tpu.memory_space<vmem>>, %arg9: memref<8x128xf32, #tpu.memory_space<vmem>>) attributes {dimension_semantics = [#tpu.dimension_semantics<parallel>], iteration_bounds = array<i64: 1>, scalar_prefetch = 0 : i64, scratch_operands = 0 : i64, tpu.core_type = #tpu.core_type<tc>, window_params = [{transform_indices = @transform_0, window_bounds = array<i64: 8, 16>}, {pipeline_mode = #tpu.pipeline_mode<synchronous>, transform_indices = @transform_1, window_bounds = array<i64: 16, 64>}, {pipeline_mode = #tpu.pipeline_mode<synchronous>, transform_indices = @transform_2, window_bounds = array<i64: 2, 16>}, {pipeline_mode = #tpu.pipeline_mode<synchronous>, transform_indices = @transform_3, window_bounds = array<i64: 16, 128>}, {pipeline_mode = #tpu.pipeline_mode<synchronous>, transform_indices = @transform_4, window_bounds = array<i64: 64, 256>}, {pipeline_mode = #tpu.pipeline_mode<synchronous>, transform_indices = @transform_5, window_bounds = array<i64: 1, 256>}, {pipeline_mode = #tpu.pipeline_mode<synchronous>, transform_indices = @transform_6, window_bounds = array<i64: 256, 128>}, {pipeline_mode = #tpu.pipeline_mode<synchronous>, transform_indices = @transform_7, window_bounds = array<i64: 1, 128>}, {transform_indices = @transform_8, window_bounds = array<i64: 8, 128>}]} {
    %c0 = arith.constant 0 : index
    %c0_0 = arith.constant 0 : index
    %0 = vector.load %arg1[%c0, %c0_0] : memref<8x16xf32, #tpu.memory_space<vmem>>, vector<8x16xf32>
    %c0_1 = arith.constant 0 : index
    %c0_2 = arith.constant 0 : index
    %1 = vector.load %arg2[%c0_1, %c0_2] : memref<16x64xf32, #tpu.memory_space<vmem>>, vector<16x64xf32>
    %cst = arith.constant dense<0.000000e+00> : vector<8x64xf32>
    %2 = tpu.matmul %0, %1, %cst {dimension_numbers = #tpu.dot_dimension_numbers<[1], [0], [0], [1], [0, 0, 1, 1], [], []>, precision = #tpu.contract_precision<fp32>} : vector<8x16xf32>, vector<16x64xf32>, vector<8x64xf32> -> vector<8x64xf32>
    %3 = math.sin %2 : vector<8x64xf32>
    %c0_3 = arith.constant 0 : index
    %c0_4 = arith.constant 0 : index
    %4 = vector.load %arg5[%c0_3, %c0_4] : memref<64x256xf32, #tpu.memory_space<vmem>>, vector<64x256xf32>
    %cst_5 = arith.constant dense<0.000000e+00> : vector<8x256xf32>
    %5 = tpu.matmul %3, %4, %cst_5 {dimension_numbers = #tpu.dot_dimension_numbers<[1], [0], [0], [1], [0, 0, 1, 1], [], []>} : vector<8x64xf32>, vector<64x256xf32>, vector<8x256xf32> -> vector<8x256xf32>
    %c0_6 = arith.constant 0 : index
    %c0_7 = arith.constant 0 : index
    %6 = vector.load %arg6[%c0_6, %c0_7] : memref<1x256xf32, #tpu.memory_space<vmem>>, vector<1x256xf32>
    %7 = vector.broadcast %6 : vector<1x256xf32> to vector<8x256xf32>
    %8 = arith.addf %5, %7 : vector<8x256xf32>
    %cst_8 = arith.constant 0.000000e+00 : f32
    %9 = vector.broadcast %cst_8 : f32 to vector<8x256xf32>
    %10 = arith.maximumf %8, %9 : vector<8x256xf32>
    %c0_9 = arith.constant 0 : index
    %c0_10 = arith.constant 0 : index
    %11 = vector.load %arg7[%c0_9, %c0_10] : memref<256x128xf32, #tpu.memory_space<vmem>>, vector<256x128xf32>
    %cst_11 = arith.constant dense<0.000000e+00> : vector<8x128xf32>
    %12 = tpu.matmul %10, %11, %cst_11 {dimension_numbers = #tpu.dot_dimension_numbers<[1], [0], [0], [1], [0, 0, 1, 1], [], []>} : vector<8x256xf32>, vector<256x128xf32>, vector<8x128xf32> -> vector<8x128xf32>
    %c0_12 = arith.constant 0 : index
    %c0_13 = arith.constant 0 : index
    %13 = vector.load %arg8[%c0_12, %c0_13] : memref<1x128xf32, #tpu.memory_space<vmem>>, vector<1x128xf32>
    %14 = vector.broadcast %13 : vector<1x128xf32> to vector<8x128xf32>
    %15 = arith.addf %12, %14 : vector<8x128xf32>
    %c0_14 = arith.constant 0 : index
    %c0_15 = arith.constant 0 : index
    %16 = vector.load %arg3[%c0_14, %c0_15] : memref<2x16xf32, #tpu.memory_space<vmem>>, vector<1x16xf32>
    %c1 = arith.constant 1 : index
    %c0_16 = arith.constant 0 : index
    %17 = vector.load %arg3[%c1, %c0_16] : memref<2x16xf32, #tpu.memory_space<vmem>>, vector<1x16xf32>
    %18 = vector.broadcast %17 : vector<1x16xf32> to vector<8x16xf32>
    %19 = arith.cmpf olt, %0, %18 : vector<8x16xf32>
    %20 = vector.broadcast %16 : vector<1x16xf32> to vector<8x16xf32>
    %21 = arith.cmpf ogt, %0, %20 : vector<8x16xf32>
    %22 = arith.andi %19, %21 : vector<8x16xi1>
    %23 = arith.extui %22 : vector<8x16xi1> to vector<8x16xi32>
    %24 = arith.sitofp %23 : vector<8x16xi32> to vector<8x16xf32>
    %c0_17 = arith.constant 0 : index
    %c0_18 = arith.constant 0 : index
    %25 = vector.load %arg4[%c0_17, %c0_18] : memref<16x128xf32, #tpu.memory_space<vmem>>, vector<16x128xf32>
    %cst_19 = arith.constant dense<0.000000e+00> : vector<8x128xf32>
    %26 = tpu.matmul %24, %25, %cst_19 {dimension_numbers = #tpu.dot_dimension_numbers<[1], [0], [0], [1], [0, 0, 1, 1], [], []>} : vector<8x16xf32>, vector<16x128xf32>, vector<8x128xf32> -> vector<8x128xf32>
    %cst_20 = arith.constant 1.500000e+00 : f32
    %27 = vector.broadcast %cst_20 : f32 to vector<8x128xf32>
    %28 = arith.cmpf ogt, %26, %27 : vector<8x128xf32>
    %cst_21 = arith.constant 0.000000e+00 : f32
    %29 = vector.broadcast %cst_21 : f32 to vector<8x128xf32>
    %30 = arith.select %28, %15, %29 : vector<8x128xi1>, vector<8x128xf32>
    %c0_22 = arith.constant 0 : index
    %c0_23 = arith.constant 0 : index
    %31 = vector.load %arg9[%c0_22, %c0_23] : memref<8x128xf32, #tpu.memory_space<vmem>>, vector<8x128xf32>
    tpu.vector_store %arg9[%c0_22, %c0_23], %30 {strides = array<i32>} : memref<8x128xf32, #tpu.memory_space<vmem>>, vector<8x128xf32>,
    return
  }
  func.func @transform_0(%arg0: i32) -> (i32, i32) {
    %c0_i32 = arith.constant 0 : i32
    %c0_i32_0 = arith.constant 0 : i32
    return %arg0, %c0_i32 : i32, i32
  }
  func.func @transform_1(%arg0: i32) -> (i32, i32) {
    %c0_i32 = arith.constant 0 : i32
    %c0_i32_0 = arith.constant 0 : i32
    %c0_i32_1 = arith.constant 0 : i32
    return %c0_i32, %c0_i32_0 : i32, i32
  }
  func.func @transform_2(%arg0: i32) -> (i32, i32) {
    %c0_i32 = arith.constant 0 : i32
    %c0_i32_0 = arith.constant 0 : i32
    %c0_i32_1 = arith.constant 0 : i32
    return %c0_i32, %c0_i32_0 : i32, i32
  }
  func.func @transform_3(%arg0: i32) -> (i32, i32) {
    %c0_i32 = arith.constant 0 : i32
    %c0_i32_0 = arith.constant 0 : i32
    %c0_i32_1 = arith.constant 0 : i32
    return %c0_i32, %c0_i32_0 : i32, i32
  }
  func.func @transform_4(%arg0: i32) -> (i32, i32) {
    %c0_i32 = arith.constant 0 : i32
    %c0_i32_0 = arith.constant 0 : i32
    %c0_i32_1 = arith.constant 0 : i32
    return %c0_i32, %c0_i32_0 : i32, i32
  }
  func.func @transform_5(%arg0: i32) -> (i32, i32) {
    %c0_i32 = arith.constant 0 : i32
    %c0_i32_0 = arith.constant 0 : i32
    %c0_i32_1 = arith.constant 0 : i32
    return %c0_i32, %c0_i32_0 : i32, i32
  }
  func.func @transform_6(%arg0: i32) -> (i32, i32) {
    %c0_i32 = arith.constant 0 : i32
    %c0_i32_0 = arith.constant 0 : i32
    %c0_i32_1 = arith.constant 0 : i32
    return %c0_i32, %c0_i32_0 : i32, i32
  }
  func.func @transform_7(%arg0: i32) -> (i32, i32) {
    %c0_i32 = arith.constant 0 : i32
    %c0_i32_0 = arith.constant 0 : i32
    %c0_i32_1 = arith.constant 0 : i32
    return %c0_i32, %c0_i32_0 : i32, i32
  }
  func.func @transform_8(%arg0: i32) -> (i32, i32) {
    %c0_i32 = arith.constant 0 : i32
    %c0_i32_0 = arith.constant 0 : i32
    return %arg0, %c0_i32 : i32, i32
  }
}

</mosaic_0001>

<bundles_post_ra>
// kernel: tpu_custom_call.1
= control target key start
LH: loop header
LB: loop body
LE: loop exit
PB: predicated region body
PF: predicated region fallthrough
CT: control target
= control target key end

     0   :  { %13 = vsyncpa [#allocation3], 0  ;;  %s1565_s0 = inlined_call_operand.hbm [shape: f32[8,16], index: 0, kind: input, shape index: {}]   ;;  %s1566_s1 = inlined_call_operand.hbm [shape: f32[16,64], index: 1, kind: input, shape index: {}]   ;;  %s1567_s2 = inlined_call_operand.vmem [shape: f32[2,16], index: 2, kind: input, shape index: {}]   ;;  %s1568_s3 = inlined_call_operand.hbm [shape: f32[16,128], index: 3, kind: input, shape index: {}]   ;;  %s1569_s4 = inlined_call_operand.hbm [shape: f32[64,256], index: 4, kind: input, shape index: {}]   ;;  %s1570_s5 = inlined_call_operand.vmem [shape: f32[1,256], index: 5, kind: input, shape index: {}]   ;;  %s1571_s6 = inlined_call_operand.hbm [shape: f32[256,128], index: 6, kind: input, shape index: {}]   ;;  %s1572_s7 = inlined_call_operand.vmem [shape: f32[1,128], index: 7, kind: input, shape index: {}]   ;;  %s1573_s8 = inlined_call_operand.hbm [shape: f32[8,128], index: 8, kind: output, shape index: {}]  }
   0x1   :  { %14 = vsyncpa [#allocation6], 0 }
   0x2   :  { %15 = vsyncpa [#allocation9], 0 }
   0x3   :  { %16 = vsyncpa [#allocation4], 0  ;;  %s1350_s27 = smov [#allocation5]   ;;  %s1210_s9 = scalar_lea.hbm %s1566_s1, 256 }
   0x4   :  { %s32_s28 = sshll.u32 %s1350_s27, 4  ;;  %p1211_p0 = scmp.ne.s32.totalorder %s1566_s1, %s1210_s9  ;;  %s33_s28 = int_to_ptr.vmem [resolvable:$true] %s32_s28 }
   0x5   :  { %p1214_p1 = scmp.lt.u32.totalorder %s1210_s9, %s1566_s1 }
   0x7   :  { %p1216_p2 = pnand %p1214_p1, %p1211_p0 }
   0x9   :  { %1219 = shalt.err (!%p1216_p2)
}
   0xa   :  { %s1220_s14 = scalar_lea.vmem %s33_s28, 256  ;;  %p1225_p4 = scmp.lt.s32.totalorder %s33_s28, %s33_s28 }
   0xb   :  { %p1221_p3 = scmp.ne.s32.totalorder %s33_s28, %s1220_s14  ;;  %p1226_p5 = scmp.lt.s32.totalorder %s1220_s14, %s1220_s14 }
   0xd   :  { %p1227_p6 = por %p1226_p5, %p1225_p4 }
   0xf   :  { %p1228_p7 = pnand %p1227_p6, %p1221_p3 }
  0x11   :  { %1231 = shalt.err (!%p1228_p7)
}
  0x12   :  { %s1351_s15 = smov 128   ;;  %s1352_s16 = smov 8  }
  0x13   :  { %38 = dma.hbm_to_vmem [thread:$0]  %s1566_s1, 256, %s33_s28, [#allocation6], %s1351_s15, %s1351_s15, %s1352_s16  }
  0x14   :  { %s1353_s19 = smov [#allocation8]   ;;  %s1232_s23 = scalar_lea.hbm %s1569_s4, 2048 }
  0x15   :  { %s58_s20 = sshll.u32 %s1353_s19, 4  ;;  %p1233_p8 = scmp.ne.s32.totalorder %s1569_s4, %s1232_s23  ;;  %s59_s20 = int_to_ptr.vmem [resolvable:$true] %s58_s20 }
  0x16   :  { %p1236_p9 = scmp.lt.u32.totalorder %s1232_s23, %s1569_s4 }
  0x18   :  { %p1238_p10 = pnand %p1236_p9, %p1233_p8 }
  0x1a   :  { %1241 = shalt.err (!%p1238_p10)
}
  0x1b   :  { %s1242_s29 = scalar_lea.vmem %s59_s20, 2048  ;;  %p1247_p12 = scmp.lt.s32.totalorder %s59_s20, %s59_s20 }
  0x1c   :  { %p1243_p11 = scmp.ne.s32.totalorder %s59_s20, %s1242_s29  ;;  %p1248_p13 = scmp.lt.s32.totalorder %s1242_s29, %s1242_s29 }
  0x1e   :  { %p1249_p0 = por %p1248_p13, %p1247_p12 }
  0x20   :  { %p1250_p1 = pnand %p1249_p0, %p1243_p11 }
  0x22   :  { %1253 = shalt.err (!%p1250_p1)
}
  0x23   :  { %s1354_s1 = smov 256   ;;  %s1355_s28 = smov 16  }
  0x24   :  { %64 = dma.hbm_to_vmem [thread:$0]  %s1569_s4, 2048, %s59_s20, [#allocation9], %s1354_s1, %s1354_s1, %s1355_s28  }
  0x25   :  { %s1356_s10 = smov [#allocation2]   ;;  %s1357_s12 = smov [#allocation7]  }
  0x26   :  { %s23_s11 = sshll.u32 %s1356_s10, 4  ;;  %s46_s13 = sshll.u32 %s1357_s12, 4  ;;  %s24_s11 = int_to_ptr.vmem [resolvable:$true] %s23_s11  ;;  %s1441_s13 = int_to_ptr.vmem [resolvable:$true] %s46_s13 }
  0x27   :  { %s1254_s18 = scalar_lea.hbm %s1565_s0, 128 }
  0x28   :  { %p1255_p2 = scmp.ne.s32.totalorder %s1565_s0, %s1254_s18  ;;  %p1258_p3 = scmp.lt.u32.totalorder %s1254_s18, %s1565_s0 }
  0x2a   :  { %p1260_p4 = pnand %p1258_p3, %p1255_p2 }
  0x2c   :  { %1263 = shalt.err (!%p1260_p4)
}
  0x2d   :  { %s1264_s4 = scalar_lea.vmem %s24_s11, 128  ;;  %p1269_p6 = scmp.lt.s32.totalorder %s24_s11, %s24_s11 }
  0x2e   :  { %p1265_p5 = scmp.ne.s32.totalorder %s24_s11, %s1264_s4  ;;  %p1270_p7 = scmp.lt.s32.totalorder %s1264_s4, %s1264_s4 }
  0x30   :  { %p1271_p8 = por %p1270_p7, %p1269_p6 }
  0x32   :  { %p1272_p9 = pnand %p1271_p8, %p1265_p5 }
  0x34   :  { %1275 = shalt.err (!%p1272_p9)
}
  0x35   :  { %26 = dma.hbm_to_vmem [thread:$0]  %s1565_s0, 128, %s24_s11, [#allocation3]  }
  0x36   :  { %s1276_s27 = scalar_lea.hbm %s1568_s3, 256 }
  0x37   :  { %p1277_p10 = scmp.ne.s32.totalorder %s1568_s3, %s1276_s27  ;;  %p1280_p11 = scmp.lt.u32.totalorder %s1276_s27, %s1568_s3 }
  0x39   :  { %p1282_p12 = pnand %p1280_p11, %p1277_p10 }
  0x3b   :  { %1285 = shalt.err (!%p1282_p12)
}
  0x3c   :  { %s1286_s9 = scalar_lea.vmem %s1441_s13, 256  ;;  %p1291_p0 = scmp.lt.s32.totalorder %s1441_s13, %s1441_s13 }
  0x3d   :  { %p1287_p13 = scmp.ne.s32.totalorder %s1441_s13, %s1286_s9  ;;  %p1292_p1 = scmp.lt.s32.totalorder %s1286_s9, %s1286_s9 }
  0x3f   :  { %p1293_p2 = por %p1292_p1, %p1291_p0 }
  0x41   :  { %p1294_p3 = pnand %p1293_p2, %p1287_p13 }
  0x43   :  { %1297 = shalt.err (!%p1294_p3)
}
  0x44   :  { %52 = dma.hbm_to_vmem [thread:$0]  %s1568_s3, 256, %s1441_s13, [#allocation6], %s1351_s15, %s1351_s15, %s1352_s16  }
  0x45   :  { %s1358_s11 = smov [#allocation10]   ;;  %s1298_s18 = scalar_lea.hbm %s1571_s6, 4096 }
  0x46   :  { %s72_s12 = sshll.u32 %s1358_s11, 4  ;;  %p1299_p4 = scmp.ne.s32.totalorder %s1571_s6, %s1298_s18  ;;  %s73_s12 = int_to_ptr.vmem [resolvable:$true] %s72_s12 }
  0x47   :  { %p1302_p5 = scmp.lt.u32.totalorder %s1298_s18, %s1571_s6 }
  0x49   :  { %p1304_p6 = pnand %p1302_p5, %p1299_p4 }
  0x4b   :  { %1307 = shalt.err (!%p1304_p6)
}
  0x4c   :  { %s1308_s4 = scalar_lea.vmem %s73_s12, 4096  ;;  %p1313_p8 = scmp.lt.s32.totalorder %s73_s12, %s73_s12 }
  0x4d   :  { %p1309_p7 = scmp.ne.s32.totalorder %s73_s12, %s1308_s4  ;;  %p1314_p9 = scmp.lt.s32.totalorder %s1308_s4, %s1308_s4 }
  0x4f   :  { %p1315_p10 = por %p1314_p9, %p1313_p8 }
  0x51   :  { %p1316_p11 = pnand %p1315_p10, %p1309_p7 }
  0x53   :  { %1319 = shalt.err (!%p1316_p11)
}
  0x54   :  { %78 = dma.hbm_to_vmem [thread:$0]  %s1571_s6, 4096, %s73_s12, [#allocation9], %s1351_s15, %s1351_s15, %s1352_s16  }
  0x55   :  { %1342 = dma.done.wait [#allocation3], 128  }
  0x56   :  { %1343 = vsyncadd [#allocation3], 4294967168 }
  0x57   :  { %1344 = dma.done.wait [#allocation6], 512  }
  0x58   :  { %1345 = vsyncadd [#allocation6], 4294966784 }
  0x59   :  { %1346 = dma.done.wait [#allocation9], 6144  }
  0x5a   :  { %1347 = vsyncadd [#allocation9], 4294961152  ;;  %v1359_v0 = vmov 0.0|0.0   ;;  %vm1360_vm0 = vmmov 0   ;;  %v1361_v1 = vmov 0.0   ;;  %vm99_vm1 = vcmask 130048  }
  0x5b   :  { %1108 = vmatprep.subr.bf16.mxu0 %v1359_v0  ;;  %1067 = vmatprep.mubr.msk.f32.mxu0 %vm1360_vm0, %v1361_v1  ;;  %v97_v2 = vld [vmem:[#allocation5] sm:$0xff]  ;;  %v98_v3 = vld [vmem:[#allocation5 + $0x8] sm:$0xff]  ;;  %v1496_v4 = vld [vmem:[#allocation2] sm:$0xff]  ;;  %vm694_vm14 = vcmask 523264  }
  0x5c   :  { %1105 = vmatprep.subr.bf16.mxu1 %v1359_v0  ;;  %1060 = vmatprep.mubr.msk.f32.mxu1 %vm1360_vm0, %v1361_v1  ;;  %v104_v5 = vand.u32 4294901760, %v97_v2  ;;  %v107_v6 = vand.u32 4294901760, %v98_v3  ;;  %v101_v7 = vsel %vm99_vm1, %v1496_v4, 0  ;;  %v667_v25 = vld [vmem:[#allocation8 + $0x8] sm:$0xff]  ;;  %v669_v26 = vld [vmem:[#allocation8 + $0x18] sm:$0xff]  ;;  %v666_v28 = vld [vmem:[#allocation8] sm:$0xff] }
  0x5d   :  { %v170_v8 = vand.u32 4294901760, %v101_v7  ;;  %v1123_v27 = vpack.c.bf16 %v669_v26, %v667_v25  ;;  %v668_v29 = vld [vmem:[#allocation8 + $0x10] sm:$0xff]  ;;  %v671_v31 = vld [vmem:[#allocation8 + $0x28] sm:$0xff]  ;;  %v673_v32 = vld [vmem:[#allocation8 + $0x38] sm:$0xff] }
  0x5e   :  { %v182_v9 = vsub.f32 %v97_v2, %v104_v5  ;;  %v189_v10 = vsub.f32 %v98_v3, %v107_v6  ;;  %v1106_v11 = vpack.c.bf16 %v107_v6, %v104_v5  ;;  %v1125_v30 = vpack.c.bf16 %v668_v29, %v666_v28  ;;  %v670_v33 = vld [vmem:[#allocation8 + $0x20] sm:$0xff]  ;;  %v672_v35 = vld [vmem:[#allocation8 + $0x30] sm:$0xff]  ;;  %v675_v36 = vld [vmem:[#allocation8 + $0x48] sm:$0xff] }
  0x5f   :  { %v171_v12 = vsub.f32 %v101_v7, %v170_v8  ;;  %v1127_v34 = vpack.c.bf16 %v673_v32, %v671_v31  ;;  %v677_v37 = vld [vmem:[#allocation8 + $0x58] sm:$0xff]  ;;  %v1129_v38 = vpack.c.bf16 %v672_v35, %v670_v33  ;;  %v674_v40 = vld [vmem:[#allocation8 + $0x40] sm:$0xff]  ;;  %v676_v41 = vld [vmem:[#allocation8 + $0x50] sm:$0xff] }
  0x60   :  { %v183_v13 = vand.u32 4294901760, %v182_v9  ;;  %v190_v14 = vand.u32 4294901760, %v189_v10  ;;  %1107 = vmatpush3.bf16.msra.mxu1 %v1106_v11  ;;  %v1112_v23 = vpack.c.bf16 %v189_v10, %v182_v9  ;;  %v1131_v39 = vpack.c.bf16 %v677_v37, %v675_v36  ;;  %v679_v42 = vld [vmem:[#allocation8 + $0x68] sm:$0xff]  ;;  %v681_v43 = vld [vmem:[#allocation8 + $0x78] sm:$0xff]  ;;  %v678_v46 = vld [vmem:[#allocation8 + $0x60] sm:$0xff] }
  0x61   :  { %v172_v15 = vand.u32 4294901760, %v171_v12  ;;  %v1133_v44 = vpack.c.bf16 %v676_v41, %v674_v40  ;;  %v1135_v45 = vpack.c.bf16 %v681_v43, %v679_v42  ;;  %v680_v47 = vld [vmem:[#allocation8 + $0x70] sm:$0xff]  ;;  %v787_v49 = vld [vmem:[#allocation10 + $0x80] sm:$0xff]  ;;  %v788_v50 = vld [vmem:[#allocation10 + $0x88] sm:$0xff]  ;;  %v1362_v41 = vmov 683565275  }
  0x62   :  { %v184_v16 = vsub.f32 %v182_v9, %v183_v13  ;;  %v191_v17 = vsub.f32 %v189_v10, %v190_v14  ;;  %v1118_v24 = vpack.c.bf16 %v190_v14, %v183_v13  ;;  %v1137_v48 = vpack.c.bf16 %v680_v47, %v678_v46  ;;  %v771_v51 = vld [vmem:[#allocation10] sm:$0xff]  ;;  %v772_v53 = vld [vmem:[#allocation10 + $0x8] sm:$0xff]  ;;  %v789_v54 = vld [vmem:[#allocation10 + $0x90] sm:$0xff] }
  0x63   :  { %v173_v18 = vsub.f32 %v171_v12, %v172_v15  ;;  %v1139_v52 = vpack.c.bf16 %v788_v50, %v787_v49  ;;  %v790_v55 = vld [vmem:[#allocation10 + $0x98] sm:$0xff]  ;;  %v1141_v56 = vpack.c.bf16 %v772_v53, %v771_v51  ;;  %v773_v58 = vld [vmem:[#allocation10 + $0x10] sm:$0xff]  ;;  %v791_v60 = vld [vmem:[#allocation10 + $0xa0] sm:$0xff]  ;;  %v1363_v43 = vmov 2475754826  }
  0x64   :  { %v185_v19 = vand.u32 4294901760, %v184_v16  ;;  %v192_v20 = vand.u32 4294901760, %v191_v17  ;;  %v1143_v57 = vpack.c.bf16 %v790_v55, %v789_v54  ;;  %v774_v59 = vld [vmem:[#allocation10 + $0x18] sm:$0xff]  ;;  %v792_v61 = vld [vmem:[#allocation10 + $0xa8] sm:$0xff]  ;;  %v775_v2 = vld [vmem:[#allocation10 + $0x20] sm:$0xff] }
  0x65   :  { %v174_v21 = vand.u32 4294901760, %v173_v18  ;;  %1140 = vmatprep.subr.bf16.mxu1 %v1139_v52  ;;  %v1145_v62 = vpack.c.bf16 %v774_v59, %v773_v58  ;;  %v1147_v63 = vpack.c.bf16 %v792_v61, %v791_v60  ;;  %v793_v3 = vld [vmem:[#allocation10 + $0xb0] sm:$0xff]  ;;  %v794_v5 = vld [vmem:[#allocation10 + $0xb8] sm:$0xff]  ;;  %v796_v13 = vld [vmem:[#allocation10 + $0xc8] sm:$0xff]  ;;  %v1364_v46 = vmov 2131351028  }
  0x66   :  { %v1109_v22 = vpack.c.bf16 %v192_v20, %v185_v19  ;;  %v1151_v9 = vpack.c.bf16 %v794_v5, %v793_v3  ;;  %v777_v10 = vld [vmem:[#allocation10 + $0x30] sm:$0xff]  ;;  %v779_v16 = vld [vmem:[#allocation10 + $0x40] sm:$0xff]  ;;  %v780_v17 = vld [vmem:[#allocation10 + $0x48] sm:$0xff]  ;;  %v1365_v49 = vmov 2102212464  }
  0x67   :  { %1061 = vmatmul.mubr.f32.vlgmr.msra.gmra.mrb[0].mxu1 %v174_v21  ;;  %v797_v18 = vld [vmem:[#allocation10 + $0xd0] sm:$0xff]  ;;  %v798_v19 = vld [vmem:[#allocation10 + $0xd8] sm:$0xff]  ;;  %v1157_v20 = vpack.c.bf16 %v780_v17, %v779_v16  ;;  %v800_v25 = vld [vmem:[#allocation10 + $0xe8] sm:$0xff]  ;;  %v1366_v52 = vmov 920167782  }
  0x68   :  { %1110 = vmatpush3.bf16.msra.mxu0 %v1109_v22  ;;  %1142 = vmatpush3.bf16.msra.mxu1 %v1141_v56  ;;  %v1159_v21 = vpack.c.bf16 %v798_v19, %v797_v18  ;;  %v781_v22 = vld [vmem:[#allocation10 + $0x50] sm:$0xff]  ;;  %v1367_v55 = vmov 1326507024  }
  0x69   :  { %1111 = vmatprep.subr.bf16.mxu0 %v1359_v0  ;;  %1144 = vmatprep.subr.bf16.mxu1 %v1143_v57 }
  0x6b   :  { %1068 = vmatmul.mubr.f32.vlgmr.msra.gmra.mrb[0].mxu0 %v170_v8 }
  0x6c   :  { %1113 = vmatpush3.bf16.msra.mxu0 %v1112_v23  ;;  %1074 = vmatprep.mubr.msk.f32.mxu0 %vm1360_vm0, %v1361_v1  ;;  %v782_v23 = vld [vmem:[#allocation10 + $0x58] sm:$0xff] }
  0x6d   :  { %1114 = vmatprep.subr.bf16.mxu0 %v1359_v0  ;;  %1146 = vmatpush3.bf16.msra.mxu1 %v1145_v62  ;;  %v1161_v26 = vpack.c.bf16 %v782_v23, %v781_v22 }
  0x6e   :  { %1148 = vmatprep.subr.bf16.mxu1 %v1147_v63 }
  0x73   :  { %1075 = vmatmul.mubr.f32.vlgmr.msra.gmra.mrb[0].mxu0 %v171_v12  ;;  %v795_v12 = vld [vmem:[#allocation10 + $0xc0] sm:$0xff] }
  0x74   :  { %1116 = vmatpush3.bf16.msra.mxu0 %v1106_v11  ;;  %1081 = vmatprep.mubr.msk.f32.mxu0 %vm1360_vm0, %v1361_v1 }
  0x75   :  { %1117 = vmatprep.subr.bf16.mxu0 %v1359_v0 }
  0x7b   :  { %1082 = vmatmul.mubr.f32.vlgmr.msra.gmra.mrb[0].mxu0 %v172_v15  ;;  %v1155_v15 = vpack.c.bf16 %v796_v13, %v795_v12 }
  0x7c   :  { %1119 = vmatpush3.bf16.msra.mxu0 %v1118_v24  ;;  %1088 = vmatprep.mubr.msk.f32.mxu0 %vm1360_vm0, %v1361_v1  ;;  %v799_v24 = vld [vmem:[#allocation10 + $0xe0] sm:$0xff] }
  0x7d   :  { %1120 = vmatprep.subr.bf16.mxu0 %v1359_v0 }
  0x83   :  { %1089 = vmatmul.mubr.f32.vlgmr.msra.gmra.mrb[0].mxu0 %v170_v8 }
  0x84   :  { %1122 = vmatpush3.bf16.msra.mxu0 %v1106_v11  ;;  %1095 = vmatprep.mubr.msk.f32.mxu0 %vm1360_vm0, %v1361_v1  ;;  %v778_v11 = vld [vmem:[#allocation10 + $0x38] sm:$0xff] }
  0x85   :  { %1124 = vmatprep.subr.bf16.mxu0 %v1123_v27  ;;  %v1153_v14 = vpack.c.bf16 %v778_v11, %v777_v10  ;;  %v1163_v27 = vpack.c.bf16 %v800_v25, %v799_v24 }
  0x8b   :  { %1096 = vmatmul.mubr.f32.vlgmr.msra.gmra.mrb[0].mxu0 %v170_v8 }
  0x8c   :  { %762 = vmatprep.mubr.f32.mxu0 %v1361_v1  ;;  %1126 = vmatpush1.bf16.msra.mxu0 %v1125_v30 }
  0x8d   :  { %1128 = vmatprep.subr.bf16.mxu0 %v1127_v34 }
  0x90   :  { %1130 = vmatpush1.bf16.msra.mxu0 %v1129_v38 }
  0x91   :  { %1132 = vmatprep.subr.bf16.mxu0 %v1131_v39 }
  0x94   :  { %1134 = vmatpush1.bf16.msra.mxu0 %v1133_v44 }
  0x95   :  { %1136 = vmatprep.subr.bf16.mxu0 %v1135_v45 }
  0x98   :  { %1138 = vmatpush1.bf16.msra.mxu0 %v1137_v48 }
  0x99   :  { %1171 = vmatprep.subr.bf16.mxu0 %v1359_v0  ;;  %v776_v0 = vld [vmem:[#allocation10 + $0x28] sm:$0xff] }
  0x9a   :  { %v1149_v8 = vpack.c.bf16 %v776_v0, %v775_v2 }
  0x9c   :  { %1150 = vmatpush3.bf16.msra.mxu1 %v1149_v8 }
  0x9d   :  { %1152 = vmatprep.subr.bf16.mxu1 %v1151_v9 }
  0xa0   :  { %1154 = vmatpush3.bf16.msra.mxu1 %v1153_v14 }
  0xa1   :  { %1156 = vmatprep.subr.bf16.mxu1 %v1155_v15 }
  0xa4   :  { %1158 = vmatpush3.bf16.msra.mxu1 %v1157_v20 }
  0xa5   :  { %1160 = vmatprep.subr.bf16.mxu1 %v1159_v21 }
  0xa8   :  { %1162 = vmatpush3.bf16.msra.mxu1 %v1161_v26 }
  0xa9   :  { %1164 = vmatprep.subr.bf16.mxu1 %v1163_v27 }
 0x13a   :  { %v176_v6 = vpop.f32.mrb[0].mxu1 }
 0x13b   :  { %v1062_v7 = vpop.f32.mrb[1].mxu1 }
 0x15e   :  { %v558_v28 = vpop.f32.mrb[0].mxu0 }
 0x15f   :  { %v1514_v29 = vadd.f32 %v558_v28, %v176_v6  ;;  %v1097_v30 = vpop.f32.mrb[1].mxu0 }
 0x161   :  { %v565_v31 = vand.u32 2139095040, %v1514_v29  ;;  %v562_v35 = vand.u32 2147483647, %v1514_v29  ;;  %vm564_vm9 = vcmp.lt.s32.totalorder %v1514_v29, 0  ;;  %vm654_vm15 = vweird.f32 %v1514_v29 }
 0x163   :  { %v566_v32 = vshrl.u32 %v565_v31, 23  ;;  %v569_v38 = vand.u32 8388607, %v562_v35  ;;  %vm563_vm10 = vcmp.le.f32.partialorder %v562_v35, 0.7853982 }
 0x165   :  { %v990_v33 = vadd.s32 4294967169, %v566_v32  ;;  %v570_v57 = vor.u32 8388608, %v569_v38 }
 0x167   :  { %v572_v34 = vadd.s32 1, %v990_v33  ;;  %v610_v9 = vshll.u32 %v570_v57, 8 }
 0x169   :  { %vm573_vm2 = vcmp.gt.s32.totalorder %v572_v34, 0 }
 0x16a   :  { %v574_v36 = vsel %vm573_vm2, %v572_v34, 0 }
 0x16b   :  { %v576_v37 = vand.u32 31, %v574_v36  ;;  %v575_v40 = vshrl.u32 %v574_v36, 5 }
 0x16d   :  { %v577_v39 = vsub.s32 32, %v576_v37  ;;  %v579_v42 = vshll.u32 %v1362_v41, %v576_v37  ;;  %v582_v44 = vshll.u32 %v1363_v43, %v576_v37  ;;  %v585_v48 = vshll.u32 %v1364_v46, %v576_v37 }
 0x16e   :  { %v588_v51 = vshll.u32 %v1365_v49, %v576_v37  ;;  %v591_v54 = vshll.u32 %v1366_v52, %v576_v37  ;;  %vm594_vm3 = vcmp.lt.s32.totalorder %v575_v40, 1  ;;  %vm597_vm4 = vcmp.lt.s32.totalorder %v575_v40, 4 }
 0x16f   :  { %v580_v45 = vshrl.u32 %v1363_v43, %v577_v39  ;;  %v583_v47 = vshrl.u32 %v1364_v46, %v577_v39  ;;  %v586_v50 = vshrl.u32 %v1365_v49, %v577_v39  ;;  %v589_v53 = vshrl.u32 %v1366_v52, %v577_v39 }
 0x170   :  { %v592_v56 = vshrl.u32 %v1367_v55, %v577_v39  ;;  %v578_v3 = vshrl.u32 %v1362_v41, %v577_v39  ;;  %vm596_vm5 = vcmp.lt.s32.totalorder %v575_v40, 3  ;;  %vm595_vm6 = vcmp.lt.s32.totalorder %v575_v40, 2 }
 0x171   :  { %v581_v58 = vor.u32 %v580_v45, %v579_v42  ;;  %v584_v59 = vor.u32 %v583_v47, %v582_v44  ;;  %v587_v60 = vor.u32 %v586_v50, %v585_v48  ;;  %v590_v61 = vor.u32 %v589_v53, %v588_v51 }
 0x172   :  { %v593_v62 = vor.u32 %v592_v56, %v591_v54 }
 0x173   :  { %v599_v63 = vsel %vm597_vm4, %v587_v60, 2102212464  ;;  %v602_v2 = vsel %vm594_vm3, %v581_v58, %v584_v59  ;;  %v606_v0 = vsel %vm594_vm3, %v584_v59, %v587_v60  ;;  %v603_v5 = vsel %vm597_vm4, %v590_v61, 920167782 }
 0x174   :  { %v607_v6 = vsel %vm597_vm4, %v593_v62, 1326507024  ;;  %v604_v7 = vsel %vm596_vm5, %v587_v60, %v603_v5  ;;  %v598_v10 = vsel %vm594_vm3, %v578_v3, %v581_v58  ;;  %v600_v11 = vsel %vm596_vm5, %v584_v59, %v599_v63  ;;  %v784_v62 = vld [vmem:[#allocation10 + $0x68] sm:$0xff]  ;;  %v785_v5 = vld [vmem:[#allocation10 + $0x70] sm:$0xff] }
 0x175   :  { %v608_v8 = vsel %vm596_vm5, %v590_v61, %v607_v6  ;;  %v605_v12 = vsel %vm595_vm6, %v602_v2, %v604_v7  ;;  %v601_v18 = vsel %vm595_vm6, %v598_v10, %v600_v11  ;;  %v783_v61 = vld [vmem:[#allocation10 + $0x60] sm:$0xff]  ;;  %v801_v2 = vld [vmem:[#allocation10 + $0xf0] sm:$0xff]  ;;  %v786_v6 = vld [vmem:[#allocation10 + $0x78] sm:$0xff] }
 0x176   :  { %v609_v13 = vsel %vm595_vm6, %v606_v0, %v608_v8  ;;  %v1523_v16 = vmul.u32.u64.low %v610_v9, %v605_v12  ;;  %v1524_v17 = vmul.u32.u64.high %v610_v9, %v605_v12, %v1523_v16  ;;  %v617_v20 = vmul.u32 %v610_v9, %v601_v18  ;;  %v802_v0 = vld [vmem:[#allocation10 + $0xf8] sm:$0xff]  ;;  %v895_v8 = vld [vmem:[#allocation7] sm:$0xff] }
 0x177   :  { %v1520_v14 = vmul.u32.u64.low %v610_v9, %v609_v13  ;;  %v1521_v15 = vmul.u32.u64.high %v610_v9, %v609_v13, %v1520_v14  ;;  %v1165_v63 = vpack.c.bf16 %v784_v62, %v783_v61  ;;  %v1167_v3 = vpack.c.bf16 %v802_v0, %v801_v2  ;;  %v997_v10 = vld [vmem:[%s1567_s2] ss:$0 sm:$0xff]  ;;  %v996_v11 = vld [vmem:[%s1567_s2 + $0x1] ss:$0 sm:$0xff] }
 0x178   :  { %v620_v19 = vadd.s32 1, %v1524_v17  ;;  %v1169_v7 = vpack.c.bf16 %v786_v6, %v785_v5  ;;  %vm891_vm2 = vcmp.gt.f32.partialorder %v1496_v4, %v997_v10  ;;  %v684_v13 = vlaneseq }
 0x179   :  { %vm619_vm7 = vc.u32 %v1521_v15, %v1523_v16  ;;  %v618_v33 = vadd.s32 %v1523_v16, %v1521_v15  ;;  %1166 = vmatpush3.bf16.msra.mxu1 %v1165_v63  ;;  %v682_v16 = vld [vmem:[%s1570_s5] sm:$0x3]  ;;  %s1368_s5 = smov [#allocation11]  }
 0x17a   :  { %v621_v21 = vsel %vm619_vm7, %v620_v19, %v1524_v17  ;;  %1168 = vmatprep.subr.bf16.mxu1 %v1167_v3  ;;  %v685_v14 = vshrl.u32 %v684_v13, 7  ;;  %s979_s27 = sshll.u32 %s1368_s5, 4  ;;  %s980_s27 = int_to_ptr.vmem [resolvable:$true] %s979_s27 }
 0x17b   :  { %v622_v22 = vadd.s32 %v621_v21, %v617_v20  ;;  %s1320_s29 = scalar_lea.vmem %s980_s27, 128  ;;  %p1325_p13 = scmp.lt.s32.totalorder %s980_s27, %s980_s27 }
 0x17c   :  { %v686_v15 = vsub.s32 0, %v685_v14  ;;  %v690_v17 = vsub.s32 1, %v685_v14  ;;  %p1321_p12 = scmp.ne.s32.totalorder %s980_s27, %s1320_s29  ;;  %p1326_p0 = scmp.lt.s32.totalorder %s1320_s29, %s1320_s29 }
 0x17d   :  { %v623_v23 = vadd.s32 536870912, %v622_v22  ;;  %1170 = vmatpush3.bf16.msra.mxu1 %v1169_v7 }
 0x17e   :  { %v687_v18 = vrot.slane %v682_v16, %v686_v15  ;;  %v691_v19 = vrot.slane %v682_v16, %v690_v17  ;;  %p1327_p1 = por %p1326_p0, %p1325_p13 }
 0x17f   :  { %v624_v24 = vshrl.u32 %v623_v23, 30 }
 0x180   :  { %p1328_p2 = pnand %p1327_p1, %p1321_p12 }
 0x181   :  { %v625_v25 = vshll.u32 %v624_v24, 30  ;;  %v648_v46 = vsub.s32 4, %v624_v24 }
 0x183   :  { %v626_v26 = vsub.s32 %v622_v22, %v625_v25  ;;  %v649_v49 = vsel %vm564_vm9, %v648_v46, %v624_v24 }
 0x184   :  { %v651_v51 = vsel %vm563_vm10, 0, %v649_v49 }
 0x185   :  { %v628_v27 = vsub.s32 0, %v626_v26  ;;  %v655_v52 = vadd.s32 3, %v651_v51 }
 0x187   :  { %v991_v28 = vmin.u32 %v628_v27, %v626_v26  ;;  %v656_v53 = vand.u32 3, %v655_v52  ;;  %v995_v27 = vld [vmem:[%s1572_s7] ss:$0 sm:$0xff] }
 0x189   :  { %v630_v30 = vclz %v991_v28  ;;  %vm661_vm11 = vcmp.eq.s32.totalorder %v656_v53, 2  ;;  %vm658_vm12 = vcmp.eq.s32.totalorder %v656_v53, 0  ;;  %vm657_vm13 = vcmp.lt.s32.totalorder %v656_v53, 2 }
 0x18b   :  { %v992_v31 = vadd.s32 4294967294, %v630_v30 }
 0x18d   :  { %vm993_vm8 = vcmp.lt.s32.totalorder %v992_v31, 0 }
 0x18e   :  { %v633_v32 = vsel %vm993_vm8, 0, %v992_v31 }
 0x18f   :  { %v634_v34 = vsub.s32 32, %v633_v32  ;;  %v638_v36 = vsub.s32 4294967266, %v633_v32  ;;  %v635_v37 = vshll.u32 %v626_v26, %v633_v32 }
 0x191   :  { %v636_v38 = vshrl.u32 %v618_v33, %v634_v34  ;;  %v639_v39 = vadd.s32 127, %v638_v36 }
 0x193   :  { %v637_v40 = vor.u32 %v636_v38, %v635_v37  ;;  %v640_v41 = vshll.u32 %v639_v39, 23 }
 0x195   :  { %v641_v42 = vor.u32 4788187, %v640_v41  ;;  %v644_v44 = vcvt.s32.f32 %v637_v40 }
 0x197   :  { %v642_v43 = vand.u32 2147483647, %v641_v42 }
 0x199   :  { %v645_v45 = vmul.f32 %v644_v44, %v642_v43 }
 0x19b   :  { %v646_v47 = vxor.u32 2147483648, %v645_v45 }
 0x19d   :  { %v647_v48 = vsel %vm564_vm9, %v646_v47, %v645_v45 }
 0x19e   :  { %v650_v50 = vsel %vm563_vm10, %v1514_v29, %v647_v48  ;;  %v896_v29 = vld [vmem:[#allocation7 + $0x8] sm:$0xff] }
 0x19f   :  { %1206 = vcosq.f32 %v650_v50  ;;  %v1172_v9 = vpack.c.bf16 %v896_v29, %v895_v8 }
 0x1a0   :  { %1208 = vsinq.f32 %v650_v50 }
 0x1a9   :  { %v1207_v54 = vpop.eup %1206 }
 0x1aa   :  { %v1209_v55 = vpop.eup %1208  ;;  %v662_v56 = vxor.u32 2147483648, %v1207_v54 }
 0x1ab   :  { %v659_v57 = vxor.u32 2147483648, %v1209_v55 }
 0x1ac   :  { %v663_v58 = vsel %vm661_vm11, %v662_v56, %v1209_v55 }
 0x1ad   :  { %v660_v59 = vsel %vm658_vm12, %v1207_v54, %v659_v57 }
 0x1ae   :  { %v664_v35 = vsel %vm657_vm13, %v660_v59, %v663_v58 }
 0x1af   :  { %v665_v60 = vsel %vm654_vm15, nan, %v664_v35 }
 0x1b0   :  { %994 = vmatmul.mubr.msk.f32.vlgmr.msra.gmra.mrb[2].mxu0 %vm694_vm14, %v665_v60 }
 0x1b1   :  { %1102 = vmatprep.mubr.msk.f32.mxu0 %vm1360_vm0, %v1361_v1  ;;  %1173 = vmatpush3.bf16.msra.mxu0 %v1172_v9  ;;  %vm886_vm0 = vcmp.lt.f32.partialorder %v1496_v4, %v996_v11 }
 0x1b2   :  { %vm892_vm3 = vmand %vm886_vm0, %vm891_vm2 }
 0x1b3   :  { %v998_v12 = vsel %vm892_vm3, 1.0, %v1361_v1 }
 0x1b4   :  { %1103 = vmatmul.mubr.msk.f32.vlgmr.msra.gmra.mrb[4].mxu0 %vm99_vm1, %v998_v12 }
 0x283   :  { %v764_v20 = vpop.f32.mrb[2].mxu0 }
 0x284   :  { %v765_v21 = vadd.f32 %v764_v20, %v687_v18  ;;  %v766_v22 = vpop.f32.mrb[3].mxu0 }
 0x285   :  { %v767_v23 = vadd.f32 %v766_v22, %v691_v19 }
 0x286   :  { %v769_v24 = vmax.f32 %v765_v21, 0.0 }
 0x287   :  { %v770_v4 = vmax.f32 %v767_v23, 0.0  ;;  %v966_v1 = vpop.f32.mrb[4].mxu0 }
 0x288   :  { %v1104_v25 = vpop.f32.mrb[5].mxu0  ;;  %vm970_vm1 = vcmp.gt.f32.partialorder %v966_v1, 1.5 }
 0x289   :  { %874 = vmatprep.mubr.f32.mxu1 %v770_v4 }
 0x28a   :  { %875 = vmatmul.mubr.f32.vlgmr.msra.gmra.mrb[2].mxu1 %v769_v24 }
 0x35d   :  { %v1050_v26 = vpop.f32.mrb[2].mxu1 }
 0x35e   :  { %v1051_v28 = vpop.f32.mrb[3].mxu1 }
 0x35f   :  { %v1052_v30 = vadd.f32 %v1051_v28, %v1050_v26 }
 0x361   :  { %v877_v31 = vadd.f32 %v1052_v30, %v995_v27 }
 0x363   :  { %v971_v32 = vsel %vm970_vm1, %v877_v31, 0.0 }
 0x364   :  { %972 = vst [vmem:[#allocation11] sm:$0xff] %v971_v32 }
 0x365   :  { %1331 = shalt.err (!%p1328_p2)
}
 0x366   :  { %s1332_s7 = scalar_lea.hbm %s1573_s8, 128 }
 0x367   :  { %p1333_p3 = scmp.ne.s32.totalorder %s1573_s8, %s1332_s7  ;;  %p1336_p4 = scmp.lt.u32.totalorder %s1332_s7, %s1573_s8 }
 0x369   :  { %p1338_p5 = pnand %p1336_p4, %p1333_p3 }
 0x36b   :  { %1341 = shalt.err (!%p1338_p5)
}
 0x36c   :  { %982 = dma.vmem_to_hbm [thread:$0]  %s980_s27, 128, %s1573_s8, [#allocation4]  }
 0x36d   :  { %1348 = dma.done.wait [#allocation4], 128  }
 0x36e   :  { %1349 = vsyncadd [#allocation4], 4294967168 }
 0x36f   :  { %986 = vsyncpa [#allocation3], 1 }
 0x370   :  { %987 = vsyncpa [#allocation6], 1 }
 0x371   :  { %988 = vsyncpa [#allocation9], 1 }
 0x372   :  { %989 = vsyncpa [#allocation4], 1 }

</bundles_post_ra>
